<compile_context>
chip_gen: v7x
topology: tpu7x:2x2x1
jax: 0.10.0
libtpu: 0.0.40
codegen_flags: <defaults>
</compile_context>

<pallas_src>
import functools

import jax
import jax.numpy as jnp
from jax.experimental import pallas as pl
from jax.experimental.pallas import tpu as pltpu


def _nll_loss_kernel(pred_ref, tgt_ref, out_ref, *, batch):
    # pred_ref: (TB, NC) f32 log-probabilities for this batch tile
    # tgt_ref:  (TB, 1)  i32 class indices (padded rows hold -1 -> contribute 0)
    # out_ref:  (1, 1)   f32 resident accumulator / final loss
    i = pl.program_id(0)

    @pl.when(i == 0)
    def _init():
        out_ref[...] = jnp.zeros_like(out_ref)

    pred = pred_ref[...]                                         # (TB, NC)
    tgt = tgt_ref[...]                                           # (TB, 1)
    col = jax.lax.broadcasted_iota(jnp.int32, pred.shape, 1)     # lane index
    picked = jnp.where(col == tgt, pred, 0.0)                    # one-hot select
    part = jnp.sum(jnp.sum(picked, axis=0, keepdims=True),
                   axis=1, keepdims=True)                        # (1, 1)
    out_ref[...] += part

    @pl.when(i == pl.num_programs(0) - 1)
    def _finalize():
        out_ref[...] = -out_ref[...] * (1.0 / batch)


def nll_loss(pred, target, *, max_rows_per_step=1024):
    """Pallas TPU implementation of F.nll_loss(pred, target) (mean reduction)."""
    B, NC = pred.shape
    pred = pred.astype(jnp.float32)
    tgt = target.astype(jnp.int32).reshape(B, 1)

    # Tile the batch along sublanes.  Small batches -> one grid step.
    if B > max_rows_per_step:
        TB = max_rows_per_step                      # multiple of 8
    else:
        TB = ((B + 7) // 8) * 8                     # round up to sublane multiple
    Bp = ((B + TB - 1) // TB) * TB
    pad = Bp - B
    if pad:
        pred = jnp.pad(pred, ((0, pad), (0, 0)))
        # -1 never matches a class index, so padded rows contribute exactly 0.
        tgt = jnp.pad(tgt, ((0, pad), (0, 0)), constant_values=-1)

    kernel = functools.partial(_nll_loss_kernel, batch=B)
    out = pl.pallas_call(
        kernel,
        out_shape=jax.ShapeDtypeStruct((1, 1), jnp.float32),
        grid_spec=pltpu.PrefetchScalarGridSpec(
            num_scalar_prefetch=0,
            grid=(Bp // TB,),
            in_specs=[
                pl.BlockSpec((TB, NC), lambda i: (i, 0)),
                pl.BlockSpec((TB, 1), lambda i: (i, 0)),
            ],
            out_specs=pl.BlockSpec((1, 1), lambda i: (0, 0)),
        ),
        compiler_params=pltpu.CompilerParams(
            dimension_semantics=("arbitrary",)),   # output accumulates over grid
    )(pred, tgt)
    return out[0, 0]


def nll_loss_reference(pred, target):
    picked = jnp.take_along_axis(pred, target[:, None].astype(jnp.int32), axis=1)
    return -jnp.mean(picked)


if __name__ == "__main__":
    key = jax.random.PRNGKey(0)
    k_logits, k_tgt = jax.random.split(key)

    B, NCLASSES = 32, 10
    logits = jax.random.normal(k_logits, (B, NCLASSES), jnp.float32)
    pred = jax.nn.log_softmax(logits, axis=1)           # log-probabilities
    target = jax.random.randint(k_tgt, (B,), 0, NCLASSES, jnp.int32)

    loss = jax.jit(nll_loss)(pred, target)
    loss = jax.block_until_ready(loss)

    ref = jax.block_until_ready(nll_loss_reference(pred, target))
    assert loss.shape == () and loss.dtype == jnp.float32
    if not jnp.allclose(loss, ref, atol=1e-5, rtol=1e-5):
        raise AssertionError(f"Pallas loss {loss} != reference {ref}")

    print("KERNEL_OK")
</pallas_src>

<mosaic_0001>
module attributes {stable_mosaic.version = 11 : i64} {
  func.func @_nll_loss_kernel(%arg0: i32, %arg1: memref<32x10xf32, #tpu.memory_space<vmem>>, %arg2: memref<32x1xi32, #tpu.memory_space<vmem>>, %arg3: memref<1x1xf32, #tpu.memory_space<vmem>>) attributes {dimension_semantics = [#tpu.dimension_semantics<arbitrary>], iteration_bounds = array<i64: 1>, scalar_prefetch = 0 : i64, scratch_operands = 0 : i64, tpu.core_type = #tpu.core_type<tc>, window_params = [{transform_indices = @transform_0, window_bounds = array<i64: 32, 10>}, {transform_indices = @transform_1, window_bounds = array<i64: 32, 1>}, {pipeline_mode = #tpu.pipeline_mode<synchronous>, transform_indices = @transform_2, window_bounds = array<i64: 1, 1>}]} {
    %c0_i32 = arith.constant 0 : i32
    %0 = arith.cmpi eq, %arg0, %c0_i32 : i32
    %1 = arith.extui %0 : i1 to i32
    %c0_i32_0 = arith.constant 0 : i32
    %2 = arith.cmpi ne, %1, %c0_i32_0 : i32
    scf.if %2 {
      %cst_12 = arith.constant 0.000000e+00 : f32
      %20 = vector.broadcast %cst_12 : f32 to vector<1x1xf32>
      %c0_13 = arith.constant 0 : index
      %c0_14 = arith.constant 0 : index
      %21 = vector.load %arg3[%c0_13, %c0_14] : memref<1x1xf32, #tpu.memory_space<vmem>>, vector<1x1xf32>
      tpu.vector_store %arg3[%c0_13, %c0_14], %20 {strides = array<i32>} : memref<1x1xf32, #tpu.memory_space<vmem>>, vector<1x1xf32>,
    } else {
    }
    %c0 = arith.constant 0 : index
    %c0_1 = arith.constant 0 : index
    %3 = vector.load %arg1[%c0, %c0_1] : memref<32x10xf32, #tpu.memory_space<vmem>>, vector<32x10xf32>
    %c0_2 = arith.constant 0 : index
    %c0_3 = arith.constant 0 : index
    %4 = vector.load %arg2[%c0_2, %c0_3] : memref<32x1xi32, #tpu.memory_space<vmem>>, vector<32x1xi32>
    %5 = tpu.iota {dimensions = array<i32: 1>} : vector<32x10xi32>
    %6 = vector.broadcast %4 : vector<32x1xi32> to vector<32x10xi32>
    %7 = arith.cmpi eq, %5, %6 : vector<32x10xi32>
    %cst = arith.constant 0.000000e+00 : f32
    %8 = vector.broadcast %cst : f32 to vector<32x10xf32>
    %9 = arith.select %7, %3, %8 : vector<32x10xi1>, vector<32x10xf32>
    %cst_4 = arith.constant dense<0.000000e+00> : vector<10xf32>
    %10 = vector.multi_reduction <add>, %9, %cst_4 [0] : vector<32x10xf32> to vector<10xf32>
    %11 = vector.shape_cast %10 : vector<10xf32> to vector<1x10xf32>
    %cst_5 = arith.constant dense<0.000000e+00> : vector<1xf32>
    %12 = vector.multi_reduction <add>, %11, %cst_5 [1] : vector<1x10xf32> to vector<1xf32>
    %13 = vector.shape_cast %12 : vector<1xf32> to vector<1x1xf32>
    %c0_6 = arith.constant 0 : index
    %c0_7 = arith.constant 0 : index
    %14 = vector.load %arg3[%c0_6, %c0_7] : memref<1x1xf32, #tpu.memory_space<vmem>>, vector<1x1xf32>
    %15 = arith.addf %14, %13 : vector<1x1xf32>
    %c0_8 = arith.constant 0 : index
    %c0_9 = arith.constant 0 : index
    %16 = vector.load %arg3[%c0_8, %c0_9] : memref<1x1xf32, #tpu.memory_space<vmem>>, vector<1x1xf32>
    tpu.vector_store %arg3[%c0_8, %c0_9], %15 {strides = array<i32>} : memref<1x1xf32, #tpu.memory_space<vmem>>, vector<1x1xf32>,
    %c0_i32_10 = arith.constant 0 : i32
    %17 = arith.cmpi eq, %arg0, %c0_i32_10 : i32
    %18 = arith.extui %17 : i1 to i32
    %c0_i32_11 = arith.constant 0 : i32
    %19 = arith.cmpi ne, %18, %c0_i32_11 : i32
    scf.if %19 {
      %c0_12 = arith.constant 0 : index
      %c0_13 = arith.constant 0 : index
      %20 = vector.load %arg3[%c0_12, %c0_13] : memref<1x1xf32, #tpu.memory_space<vmem>>, vector<1x1xf32>
      %cst_14 = arith.constant 0.000000e+00 : f32
      %21 = vector.broadcast %cst_14 : f32 to vector<1x1xf32>
      %22 = arith.subf %21, %20 : vector<1x1xf32>
      %cst_15 = arith.constant 3.125000e-02 : f32
      %23 = vector.broadcast %cst_15 : f32 to vector<1x1xf32>
      %24 = arith.mulf %22, %23 : vector<1x1xf32>
      %c0_16 = arith.constant 0 : index
      %c0_17 = arith.constant 0 : index
      %25 = vector.load %arg3[%c0_16, %c0_17] : memref<1x1xf32, #tpu.memory_space<vmem>>, vector<1x1xf32>
      tpu.vector_store %arg3[%c0_16, %c0_17], %24 {strides = array<i32>} : memref<1x1xf32, #tpu.memory_space<vmem>>, vector<1x1xf32>,
    } else {
    }
    return
  }
  func.func @transform_0(%arg0: i32) -> (i32, i32) {
    %c0_i32 = arith.constant 0 : i32
    %c0_i32_0 = arith.constant 0 : i32
    return %arg0, %c0_i32 : i32, i32
  }
  func.func @transform_1(%arg0: i32) -> (i32, i32) {
    %c0_i32 = arith.constant 0 : i32
    %c0_i32_0 = arith.constant 0 : i32
    return %arg0, %c0_i32 : i32, i32
  }
  func.func @transform_2(%arg0: i32) -> (i32, i32) {
    %c0_i32 = arith.constant 0 : i32
    %c0_i32_0 = arith.constant 0 : i32
    %c0_i32_1 = arith.constant 0 : i32
    return %c0_i32, %c0_i32_0 : i32, i32
  }
}

</mosaic_0001>

<bundles_post_ra>
// kernel: nll_loss.1
= control target key start
LH: loop header
LB: loop body
LE: loop exit
PB: predicated region body
PF: predicated region fallthrough
CT: control target
= control target key end

     0   :  { %v119_v2 = vmov 0   ;;  %s178_s0 = inlined_call_operand.vmem [shape: f32[32,10], index: 0, kind: input, shape index: {}]   ;;  %s179_s1 = inlined_call_operand.vmem [shape: s32[32,1], index: 1, kind: input, shape index: {}]   ;;  %s180_s2 = inlined_call_operand.hbm [shape: f32[1,1], index: 2, kind: output, shape index: {}]  }
   0x1   :  { %v24_v0 = vld [vmem:[%s179_s1 + $0x10] sm:$0xff]  ;;  %v22_v1 = vld [vmem:[%s179_s1] sm:$0xff]  ;;  %94 = vset.pattern.permute.xlu1 %v119_v2  ;;  %93 = vset.pattern.permute.xlu0 %v119_v2 }
   0x2   :  { %7 = vsyncpa [#allocation3], 0  ;;  %35 = vperm.xlu1 %94, %v24_v0   ;;  %29 = vperm.xlu0 %93, %v22_v1   ;;  %v25_v3 = vld [vmem:[%s179_s1 + $0x18] sm:$0xff]  ;;  %v23_v4 = vld [vmem:[%s179_s1 + $0x8] sm:$0xff]  ;;  %v26_v5 = vlaneseq  ;;  %vm48_vm2 = vcmask 80896   ;;  %vm16_vm5 = vcmask 0  }
   0x3   :  { %v18_v9 = vld [vmem:[%s178_s0] sm:$0xff]  ;;  %v20_v10 = vld [vmem:[%s178_s0 + $0x10] sm:$0xff]  ;;  %v19_v11 = vld [vmem:[%s178_s0 + $0x8] sm:$0xff]  ;;  %v120_v33 = vmov 0.0  }
   0x4   :  { %v27_v6 = vand.u32 127, %v26_v5  ;;  %v21_v15 = vld [vmem:[%s178_s0 + $0x18] sm:$0xff]  ;;  %17 = vst.msk [vmem:[#allocation2] sm:$0x1] %vm16_vm5, %v120_v33  ;;  %s121_s0 = smov [#allocation2]  }
   0x5   :  { %s82_s24 = sshll.u32 %s121_s0, 4  ;;  %s83_s24 = int_to_ptr.vmem [resolvable:$true] %s82_s24 }
   0x6   :  { %38 = vperm.xlu1 %94, %v25_v3   ;;  %32 = vperm.xlu0 %93, %v23_v4   ;;  %s95_s25 = scalar_lea.vmem %s83_s24, 16  ;;  %s99_s26 = scalar_lea.vmem %s83_s24, 32 }
   0x7   :  { %p96_p0 = scmp.ne.s32.totalorder %s83_s24, %s95_s25  ;;  %p100_p1 = scmp.lt.s32.totalorder %s83_s24, %s83_s24 }
   0x8   :  { %p101_p2 = scmp.lt.s32.totalorder %s99_s26, %s95_s25 }
   0xa   :  { %p102_p3 = por %p101_p2, %p100_p1 }
   0xb   :  { %v65_v34 = vld [vmem:[#allocation2] sm:$0x1] }
   0xc   :  { %p103_p4 = pnand %p102_p3, %p96_p0 }
  0x81   :  { %v36_v7 = vpop.permute.xlu1 %35  ;;  %v30_v8 = vpop.permute.xlu0 %29 }
  0x82   :  { %vm40_vm0 = vcmp.eq.s32.totalorder %v27_v6, %v30_v8  ;;  %vm42_vm1 = vcmp.eq.s32.totalorder %v27_v6, %v36_v7 }
  0x83   :  { %v44_v12 = vsel %vm40_vm0, %v18_v9, 0.0  ;;  %v46_v16 = vsel %vm42_vm1, %v20_v10, 0.0 }
  0x84   :  { %v49_v18 = vsel %vm48_vm2, %v44_v12, 0.0  ;;  %v52_v22 = vsel %vm48_vm2, %v46_v16, 0.0 }
  0x85   :  { %v39_v13 = vpop.permute.xlu1 %38  ;;  %v33_v14 = vpop.permute.xlu0 %32 }
  0x86   :  { %vm43_vm3 = vcmp.eq.s32.totalorder %v27_v6, %v39_v13  ;;  %vm41_vm4 = vcmp.eq.s32.totalorder %v27_v6, %v33_v14 }
  0x87   :  { %v45_v17 = vsel %vm41_vm4, %v19_v11, 0.0  ;;  %v47_v20 = vsel %vm43_vm3, %v21_v15, 0.0 }
  0x88   :  { %v50_v19 = vsel %vm48_vm2, %v45_v17, 0.0  ;;  %v54_v24 = vsel %vm48_vm2, %v47_v20, 0.0 }
  0x89   :  { %v51_v21 = vadd.f32 %v50_v19, %v49_v18 }
  0x8b   :  { %v53_v23 = vadd.f32 %v52_v22, %v51_v21 }
  0x8d   :  { %v55_v25 = vadd.f32 %v54_v24, %v53_v23 }
  0x8f   :  { %v56_v26 = vrot.slane %v55_v25, 4 }
  0x91   :  { %v57_v27 = vadd.f32 %v56_v26, %v55_v25 }
  0x93   :  { %v58_v28 = vrot.slane %v57_v27, 2 }
  0x95   :  { %v59_v29 = vadd.f32 %v58_v28, %v57_v27 }
  0x97   :  { %v60_v30 = vrot.slane %v59_v29, 1 }
  0x99   :  { %v61_v31 = vadd.f32 %v60_v30, %v59_v29 }
  0x9b   :  { %v62_v32 = vsel %vm48_vm2, %v61_v31, 0.0 }
  0x9c   :  { %63 = vadd.xlane.f32.xlu0 %v62_v32 }
 0x129   :  { %v64_v35 = vpop.xlane.xlu0 %63 }
 0x12a   :  { %v66_v36 = vadd.f32 %v65_v34, %v64_v35 }
 0x12c   :  { %68 = vst.msk [vmem:[#allocation2] sm:$0x1] %vm16_vm5, %v66_v36 }
 0x133   :  { %v72_v37 = vld [vmem:[#allocation2] sm:$0x1] }
 0x134   :  { %v73_v38 = vsub.f32 0.0, %v72_v37 }
 0x136   :  { %v74_v39 = vmul.f32 0.03125, %v73_v38 }
 0x138   :  { %75 = vst.msk [vmem:[#allocation2] sm:$0x1] %vm16_vm5, %v74_v39 }
 0x139   :  { %106 = shalt.err (!%p103_p4)
}
 0x13a   :  { %s107_s29 = scalar_lea.hbm %s180_s2, 16 }
 0x13b   :  { %p108_p5 = scmp.ne.s32.totalorder %s180_s2, %s107_s29  ;;  %p111_p6 = scmp.lt.u32.totalorder %s107_s29, %s180_s2 }
 0x13d   :  { %p113_p7 = pnand %p111_p6, %p108_p5 }
 0x13f   :  { %116 = shalt.err (!%p113_p7)
}
 0x140   :  { %85 = dma.vmem_to_hbm [thread:$0]  %s83_s24, 16, %s180_s2, [#allocation3]  }
 0x141   :  { %117 = dma.done.wait [#allocation3], 16  }
 0x142   :  { %118 = vsyncadd [#allocation3], 4294967280 }
 0x143   :  { %89 = vsyncpa [#allocation3], 1 }

</bundles_post_ra>
